<compile_context>
chip_gen: v7x
topology: tpu7x:2x2x1
jax: 0.10.0
libtpu: 0.0.40
codegen_flags: <defaults>
</compile_context>

<pallas_src>
import functools
import numpy as np
import jax
import jax.numpy as jnp
from jax import lax
from jax.experimental import pallas as pl
from jax.experimental.pallas import tpu as pltpu


# --------------------------------------------------------------------------
# Fused kernel: one decoding step per grid iteration, state in VMEM scratch
# --------------------------------------------------------------------------
def _fused_kernel(meta_ref, xg_ref, whh_ref, wp_ref, bp_ref, valid_ref, oh_ref,
                  out_ref, h_sc, c_sc, total_sc, *, H, R):
    """
    meta_ref  : (k,)       SMEM  projection selector per step (used in index_maps only)
    xg_ref    : (n, 4H)    VMEM  x @ W_ih^T + (b_ih + b_hh) for this step's candidates
    whh_ref   : (H, 4H)    VMEM  fused hidden weight, gate order [i|f|g|o]  (resident)
    wp_ref    : (H, Rp)    VMEM  this step's projection weight (lane padded)
    bp_ref    : (1, Rp)    VMEM  this step's projection bias   (pad cols = 1.0)
    valid_ref : (n, 1)     VMEM  1.0 for real candidate rows, 0.0 for padding
    oh_ref    : (B, n, 1)  VMEM  one-hot of the consumed candidate per batch row
    out_ref   : (B, 1)     VMEM  final score (written at the last step only)
    h_sc/c_sc : (B, H)     VMEM scratch — carried LSTM state
    total_sc  : (B, R)     VMEM scratch — carried TT-chain accumulator
    """
    del meta_ref  # consumed only by the BlockSpec index_maps
    s = pl.program_id(0)
    last = pl.num_programs(0) - 1

    @pl.when(s == 0)
    def _():
        h_sc[...] = jnp.zeros_like(h_sc)
        c_sc[...] = jnp.zeros_like(c_sc)

    # ---- fused LSTM cell over all B batch rows x n candidates -------------
    xg = xg_ref[...]                                            # (n, 4H)
    hg = jnp.dot(h_sc[...], whh_ref[...],
                 preferred_element_type=jnp.float32)            # (B, 4H)
    gates = xg[None, :, :] + hg[:, None, :]                     # (B, n, 4H)

    # Two full-width activation passes instead of four quarter-width ones.
    sig = jax.nn.sigmoid(gates)
    tnh = jnp.tanh(gates)
    i_g = sig[..., 0 * H:1 * H]
    f_g = sig[..., 1 * H:2 * H]
    g_g = tnh[..., 2 * H:3 * H]
    o_g = sig[..., 3 * H:4 * H]

    c_new = f_g * c_sc[...][:, None, :] + i_g * g_g             # (B, n, H)
    h_new = o_g * jnp.tanh(c_new)                               # (B, n, H)

    # ---- in-kernel selection of the consumed candidate's state ------------
    oh = oh_ref[...]                                            # (B, n, 1)
    h_sc[...] = jnp.sum(h_new * oh, axis=1)                     # (B, H), stays in VMEM
    c_sc[...] = jnp.sum(c_new * oh, axis=1)

    # ---- projection + group-sum normalization + selection -----------------
    y = lax.dot_general(h_new, wp_ref[...],
                        dimension_numbers=(((2,), (0,)), ((), ())),
                        preferred_element_type=jnp.float32)     # (B, n, Rp)
    y = y + bp_ref[...]
    vm = valid_ref[...]                                         # (n, 1)
    ssum = jnp.sum(y * vm[None, :, :], axis=1)                  # (B, Rp)  (padded rows masked)
    ysel = jnp.sum(y * oh, axis=1)                              # (B, Rp)
    ysel = ysel / ssum                                          # exact divide

    # ---- TT-chain accumulation (kept in VMEM scratch) ----------------------
    @pl.when(s == 0)
    def _():
        total_sc[...] = ysel[:, :R]                             # (B, R)

    @pl.when(jnp.logical_and(s > 0, s < last))
    def _():
        t = total_sc[...]                                       # (B, R)
        acc = t[:, 0:1] * ysel[:, 0:R]                          # core row 0
        for r in range(1, R):
            acc = acc + t[:, r:r + 1] * ysel[:, r * R:(r + 1) * R]
        total_sc[...] = acc

    @pl.when(s == last)
    def _():
        out_ref[...] = jnp.sum(total_sc[...] * ysel[:, :R],
                               axis=1, keepdims=True)           # (B, 1)


def fused_forward(proj_sel, xg_steps, whh_t, w_proj, b_proj, valid_mask, onehot,
                  *, H, R):
    k, n_max, gw = xg_steps.shape
    B = onehot.shape[1]
    Rp = w_proj.shape[-1]

    grid_spec = pltpu.PrefetchScalarGridSpec(
        num_scalar_prefetch=1,
        grid=(k,),
        in_specs=[
            pl.BlockSpec((None, n_max, gw), lambda s, m: (s, 0, 0)),       # xg of step s
            pl.BlockSpec((H, gw), lambda s, m: (0, 0)),                    # W_hh^T (resident)
            pl.BlockSpec((None, H, Rp), lambda s, m: (m[s], 0, 0)),        # W_proj of step s
            pl.BlockSpec((None, 1, Rp), lambda s, m: (m[s], 0, 0)),        # b_proj of step s
            pl.BlockSpec((None, n_max, 1), lambda s, m: (s, 0, 0)),        # validity mask
            pl.BlockSpec((None, B, n_max, 1), lambda s, m: (s, 0, 0, 0)),  # selection one-hot
        ],
        out_specs=pl.BlockSpec((B, 1), lambda s, m: (0, 0)),
        scratch_shapes=[pltpu.VMEM((B, H), jnp.float32),    # h state
                        pltpu.VMEM((B, H), jnp.float32),    # c state
                        pltpu.VMEM((B, R), jnp.float32)],   # TT accumulator
    )
    return pl.pallas_call(
        functools.partial(_fused_kernel, H=H, R=R),
        grid_spec=grid_spec,
        out_shape=jax.ShapeDtypeStruct((B, 1), jnp.float32),
        compiler_params=pltpu.CompilerParams(
            dimension_semantics=("arbitrary",)),   # step axis carries h/c/total
    )(proj_sel, xg_steps, whh_t, w_proj, b_proj, valid_mask, onehot)


# --------------------------------------------------------------------------
# Model config (mirrors sum_model.__init__ bookkeeping)
# --------------------------------------------------------------------------
def build_config(rank, input_size, hidden_size):
    order = len(input_size)
    k = len(input_size[0])
    input_size_1d, _add = [], []
    input_set = set()
    num_emb, prev_num_emb = 0, 0
    for i in range(k):
        curr = tuple(input_size[j][i] for j in range(order))
        sz = int(np.prod(np.array(curr)))
        input_size_1d.append(sz)
        if curr not in input_set:
            input_set.add(curr)
            prev_num_emb = num_emb
            num_emb += sz
        _add.append(prev_num_emb)
    return dict(rank=rank, hidden_size=hidden_size, k=k, order=order,
                input_size_1d=input_size_1d, add=_add, num_emb=num_emb)


def build_consts(cfg):
    k, add, n_list = cfg['k'], cfg['add'], cfg['input_size_1d']
    n_max = int(-(-max(n_list) // 8) * 8)          # sublane-align candidate axis (f32)
    gather_idx = np.zeros((k, n_max), np.int32)
    valid = np.zeros((k, n_max, 1), np.float32)
    for i in range(k):
        gather_idx[i, :n_list[i]] = np.arange(add[i], add[i] + n_list[i])
        valid[i, :n_list[i], 0] = 1.0
    proj_sel = np.array([0] + [1] * (k - 2) + [2], np.int32)   # first / middle / final
    return dict(n_max=n_max,
                gather_idx=jnp.asarray(gather_idx),
                valid_mask=jnp.asarray(valid),
                proj_sel=jnp.asarray(proj_sel),
                add_arr=jnp.asarray(np.array(add, np.int32)))


def init_params(key, cfg):
    H, R = cfg['hidden_size'], cfg['rank']
    Rp = int(-(-max(R, R * R) // 128) * 128)       # lane-pad projection width
    ks = jax.random.split(key, 10)

    def u(kk, shape, scale=0.1):
        return jax.random.uniform(kk, shape, jnp.float32, -scale, scale)

    def pad(w_t, b):
        # Pad bias columns with 1.0 so padded y lanes stay finite through the
        # group-sum normalization (they are never read).
        h, r = w_t.shape
        wp = jnp.zeros((h, Rp), w_t.dtype).at[:, :r].set(w_t)
        bp = jnp.full((1, Rp), 1.0, b.dtype).at[:, :r].set(b)
        return wp, bp

    w_first, b_first = pad(u(ks[4], (H, R), 0.05), 0.5 + u(ks[5], (1, R), 0.05))
    w_middle, b_middle = pad(u(ks[6], (H, R * R), 0.05), 0.5 + u(ks[7], (1, R * R), 0.05))
    w_final, b_final = pad(u(ks[8], (H, R), 0.05), 0.5 + u(ks[9], (1, R), 0.05))

    return dict(
        emb=u(ks[0], (cfg['num_emb'], H), 0.5),      # nn.Embedding weight
        wih_t=u(ks[1], (H, 4 * H)),                  # W_ih^T fused [i|f|g|o]
        whh_t=u(ks[2], (H, 4 * H)),                  # W_hh^T fused [i|f|g|o]
        b_gates=u(ks[3], (1, 4 * H)),                # b_ih + b_hh combined
        w_proj=jnp.stack([w_first, w_middle, w_final]),   # (3, H, Rp)
        b_proj=jnp.stack([b_first, b_middle, b_final]),   # (3, 1, Rp)
    )


# --------------------------------------------------------------------------
# Forward pass (semantics of sum_model.forward)
# --------------------------------------------------------------------------
def sum_model_forward(params, _input, cfg, consts):
    H, R = cfg['hidden_size'], cfg['rank']
    n_max = consts['n_max']

    # Hoisted batch-invariant x-path, gathered once into the (k, n_max, 4H)
    # step layout consumed by the fused kernel (static indices -> one gather).
    emb_gates = jnp.dot(params['emb'], params['wih_t']) + params['b_gates']
    xg_steps = emb_gates[consts['gather_idx']]                   # (k, n_max, 4H)

    # Per-batch consumed-candidate one-hots (the only input-dependent glue).
    local = _input.T.astype(jnp.int32) - consts['add_arr'][:, None]   # (k, B)
    onehot = (local[:, :, None] ==
              jnp.arange(n_max, dtype=jnp.int32)[None, None, :])
    onehot = onehot.astype(jnp.float32)[..., None]               # (k, B, n_max, 1)

    out = fused_forward(consts['proj_sel'], xg_steps, params['whh_t'],
                        params['w_proj'], params['b_proj'],
                        consts['valid_mask'], onehot, H=H, R=R)  # (B, 1)
    return out[:, 0]


# --------------------------------------------------------------------------
if __name__ == "__main__":
    rank, hidden_size = 4, 32
    input_size = [[6, 5, 7], [2, 3, 2]]   # order=2, k=3 -> candidates per step: 12, 15, 14
    cfg = build_config(rank, input_size, hidden_size)
    consts = build_consts(cfg)
    B = 2

    key = jax.random.PRNGKey(0)
    pkey, ikey = jax.random.split(key)
    params = init_params(pkey, cfg)

    # _input: (B, k); column i holds global embedding ids in [add[i], add[i] + n_i)
    cols = []
    for i in range(cfg['k']):
        ikey, sub = jax.random.split(ikey)
        cols.append(jax.random.randint(sub, (B,), cfg['add'][i],
                                       cfg['add'][i] + cfg['input_size_1d'][i],
                                       dtype=jnp.int32))
    inputs = jnp.stack(cols, axis=1)

    fwd = jax.jit(lambda p, x: sum_model_forward(p, x, cfg, consts))
    out = fwd(params, inputs)
    jax.block_until_ready(out)
    assert out.shape == (B,) and out.dtype == jnp.float32
    assert bool(jnp.all(jnp.isfinite(out)))
    print("KERNEL_OK")
</pallas_src>

<mosaic_0001>
module attributes {stable_mosaic.version = 11 : i64} {
  func.func @_fused_kernel(%arg0: i32, %arg1: memref<3xi32, #tpu.memory_space<smem>>, %arg2: memref<1x16x128xf32, #tpu.memory_space<vmem>>, %arg3: memref<32x128xf32, #tpu.memory_space<vmem>>, %arg4: memref<1x32x128xf32, #tpu.memory_space<vmem>>, %arg5: memref<1x1x128xf32, #tpu.memory_space<vmem>>, %arg6: memref<1x16x1xf32, #tpu.memory_space<vmem>>, %arg7: memref<1x2x16x1xf32, #tpu.memory_space<vmem>>, %arg8: memref<2x1xf32, #tpu.memory_space<vmem>>, %arg9: memref<2x32xf32, #tpu.memory_space<vmem>>, %arg10: memref<2x32xf32, #tpu.memory_space<vmem>>, %arg11: memref<2x4xf32, #tpu.memory_space<vmem>>) attributes {dimension_semantics = [#tpu.dimension_semantics<arbitrary>], iteration_bounds = array<i64: 3>, scalar_prefetch = 1 : i64, scratch_operands = 3 : i64, tpu.core_type = #tpu.core_type<tc>, window_params = [{transform_indices = @transform_0, window_bounds = array<i64: 1, 16, 128>}, {pipeline_mode = #tpu.pipeline_mode<synchronous>, transform_indices = @transform_1, window_bounds = array<i64: 32, 128>}, {transform_indices = @transform_2, window_bounds = array<i64: 1, 32, 128>}, {transform_indices = @transform_3, window_bounds = array<i64: 1, 1, 128>}, {transform_indices = @transform_4, window_bounds = array<i64: 1, 16, 1>}, {transform_indices = @transform_5, window_bounds = array<i64: 1, 2, 16, 1>}, {pipeline_mode = #tpu.pipeline_mode<synchronous>, transform_indices = @transform_6, window_bounds = array<i64: 2, 1>}]} {
    %c0_i32 = arith.constant 0 : i32
    %0 = arith.cmpi eq, %arg0, %c0_i32 : i32
    %1 = arith.extui %0 : i1 to i32
    %c0_i32_0 = arith.constant 0 : i32
    %2 = arith.cmpi ne, %1, %c0_i32_0 : i32
    scf.if %2 {
      %cst_38 = arith.constant 0.000000e+00 : f32
      %70 = vector.broadcast %cst_38 : f32 to vector<2x32xf32>
      %c0_39 = arith.constant 0 : index
      %c0_40 = arith.constant 0 : index
      %71 = vector.load %arg9[%c0_39, %c0_40] : memref<2x32xf32, #tpu.memory_space<vmem>>, vector<2x32xf32>
      tpu.vector_store %arg9[%c0_39, %c0_40], %70 {strides = array<i32>} : memref<2x32xf32, #tpu.memory_space<vmem>>, vector<2x32xf32>,
      %cst_41 = arith.constant 0.000000e+00 : f32
      %72 = vector.broadcast %cst_41 : f32 to vector<2x32xf32>
      %c0_42 = arith.constant 0 : index
      %c0_43 = arith.constant 0 : index
      %73 = vector.load %arg10[%c0_42, %c0_43] : memref<2x32xf32, #tpu.memory_space<vmem>>, vector<2x32xf32>
      tpu.vector_store %arg10[%c0_42, %c0_43], %72 {strides = array<i32>} : memref<2x32xf32, #tpu.memory_space<vmem>>, vector<2x32xf32>,
    } else {
    }
    %c0 = arith.constant 0 : index
    %c0_1 = arith.constant 0 : index
    %c0_2 = arith.constant 0 : index
    %3 = vector.load %arg2[%c0, %c0_1, %c0_2] : memref<1x16x128xf32, #tpu.memory_space<vmem>>, vector<1x16x128xf32>
    %4 = vector.shape_cast %3 : vector<1x16x128xf32> to vector<16x128xf32>
    %c0_3 = arith.constant 0 : index
    %c0_4 = arith.constant 0 : index
    %5 = vector.load %arg9[%c0_3, %c0_4] : memref<2x32xf32, #tpu.memory_space<vmem>>, vector<2x32xf32>
    %c0_5 = arith.constant 0 : index
    %c0_6 = arith.constant 0 : index
    %6 = vector.load %arg3[%c0_5, %c0_6] : memref<32x128xf32, #tpu.memory_space<vmem>>, vector<32x128xf32>
    %cst = arith.constant dense<0.000000e+00> : vector<2x128xf32>
    %7 = tpu.matmul %5, %6, %cst {dimension_numbers = #tpu.dot_dimension_numbers<[1], [0], [0], [1], [0, 0, 1, 1], [], []>} : vector<2x32xf32>, vector<32x128xf32>, vector<2x128xf32> -> vector<2x128xf32>
    %8 = vector.shape_cast %4 : vector<16x128xf32> to vector<1x16x128xf32>
    %9 = vector.shape_cast %7 : vector<2x128xf32> to vector<2x1x128xf32>
    %10 = vector.broadcast %8 : vector<1x16x128xf32> to vector<2x16x128xf32>
    %11 = vector.broadcast %9 : vector<2x1x128xf32> to vector<2x16x128xf32>
    %12 = arith.addf %10, %11 : vector<2x16x128xf32>
    %13 = arith.negf %12 : vector<2x16x128xf32>
    %14 = math.exp %13 : vector<2x16x128xf32>
    %cst_7 = arith.constant 1.000000e+00 : f32
    %15 = vector.broadcast %cst_7 : f32 to vector<2x16x128xf32>
    %16 = arith.addf %15, %14 : vector<2x16x128xf32>
    %17 = arith.divf %15, %16 : vector<2x16x128xf32>
    %18 = math.tanh %12 : vector<2x16x128xf32>
    %19 = vector.extract_strided_slice %17 {offsets = [0, 0, 0], sizes = [2, 16, 32], strides = [1, 1, 1]} : vector<2x16x128xf32> to vector<2x16x32xf32>
    %20 = vector.extract_strided_slice %17 {offsets = [0, 0, 32], sizes = [2, 16, 32], strides = [1, 1, 1]} : vector<2x16x128xf32> to vector<2x16x32xf32>
    %21 = vector.extract_strided_slice %18 {offsets = [0, 0, 64], sizes = [2, 16, 32], strides = [1, 1, 1]} : vector<2x16x128xf32> to vector<2x16x32xf32>
    %22 = vector.extract_strided_slice %17 {offsets = [0, 0, 96], sizes = [2, 16, 32], strides = [1, 1, 1]} : vector<2x16x128xf32> to vector<2x16x32xf32>
    %c0_8 = arith.constant 0 : index
    %c0_9 = arith.constant 0 : index
    %23 = vector.load %arg10[%c0_8, %c0_9] : memref<2x32xf32, #tpu.memory_space<vmem>>, vector<2x32xf32>
    %24 = vector.shape_cast %23 : vector<2x32xf32> to vector<2x1x32xf32>
    %25 = vector.broadcast %24 : vector<2x1x32xf32> to vector<2x16x32xf32>
    %26 = arith.mulf %20, %25 : vector<2x16x32xf32>
    %27 = arith.mulf %19, %21 : vector<2x16x32xf32>
    %28 = arith.addf %26, %27 : vector<2x16x32xf32>
    %29 = math.tanh %28 : vector<2x16x32xf32>
    %30 = arith.mulf %22, %29 : vector<2x16x32xf32>
    %c0_10 = arith.constant 0 : index
    %c0_11 = arith.constant 0 : index
    %c0_12 = arith.constant 0 : index
    %c0_13 = arith.constant 0 : index
    %31 = vector.load %arg7[%c0_10, %c0_11, %c0_12, %c0_13] : memref<1x2x16x1xf32, #tpu.memory_space<vmem>>, vector<1x2x16x1xf32>
    %32 = vector.shape_cast %31 : vector<1x2x16x1xf32> to vector<2x16x1xf32>
    %33 = vector.broadcast %32 : vector<2x16x1xf32> to vector<2x16x32xf32>
    %34 = arith.mulf %30, %33 : vector<2x16x32xf32>
    %cst_14 = arith.constant dense<0.000000e+00> : vector<2x32xf32>
    %35 = vector.multi_reduction <add>, %34, %cst_14 [1] : vector<2x16x32xf32> to vector<2x32xf32>
    %c0_15 = arith.constant 0 : index
    %c0_16 = arith.constant 0 : index
    %36 = vector.load %arg9[%c0_15, %c0_16] : memref<2x32xf32, #tpu.memory_space<vmem>>, vector<2x32xf32>
    tpu.vector_store %arg9[%c0_15, %c0_16], %35 {strides = array<i32>} : memref<2x32xf32, #tpu.memory_space<vmem>>, vector<2x32xf32>,
    %37 = vector.broadcast %32 : vector<2x16x1xf32> to vector<2x16x32xf32>
    %38 = arith.mulf %28, %37 : vector<2x16x32xf32>
    %cst_17 = arith.constant dense<0.000000e+00> : vector<2x32xf32>
    %39 = vector.multi_reduction <add>, %38, %cst_17 [1] : vector<2x16x32xf32> to vector<2x32xf32>
    %c0_18 = arith.constant 0 : index
    %c0_19 = arith.constant 0 : index
    %40 = vector.load %arg10[%c0_18, %c0_19] : memref<2x32xf32, #tpu.memory_space<vmem>>, vector<2x32xf32>
    tpu.vector_store %arg10[%c0_18, %c0_19], %39 {strides = array<i32>} : memref<2x32xf32, #tpu.memory_space<vmem>>, vector<2x32xf32>,
    %c0_20 = arith.constant 0 : index
    %c0_21 = arith.constant 0 : index
    %c0_22 = arith.constant 0 : index
    %41 = vector.load %arg4[%c0_20, %c0_21, %c0_22] : memref<1x32x128xf32, #tpu.memory_space<vmem>>, vector<1x32x128xf32>
    %42 = vector.shape_cast %41 : vector<1x32x128xf32> to vector<32x128xf32>
    %cst_23 = arith.constant dense<0.000000e+00> : vector<2x16x128xf32>
    %43 = tpu.matmul %30, %42, %cst_23 {dimension_numbers = #tpu.dot_dimension_numbers<[2], [0], [0, 1], [1], [0, 0, 0, 1, 1, 1], [], []>} : vector<2x16x32xf32>, vector<32x128xf32>, vector<2x16x128xf32> -> vector<2x16x128xf32>
    %c0_24 = arith.constant 0 : index
    %c0_25 = arith.constant 0 : index
    %c0_26 = arith.constant 0 : index
    %44 = vector.load %arg5[%c0_24, %c0_25, %c0_26] : memref<1x1x128xf32, #tpu.memory_space<vmem>>, vector<1x1x128xf32>
    %45 = vector.shape_cast %44 : vector<1x1x128xf32> to vector<1x128xf32>
    %46 = vector.shape_cast %45 : vector<1x128xf32> to vector<1x1x128xf32>
    %47 = vector.broadcast %46 : vector<1x1x128xf32> to vector<2x16x128xf32>
    %48 = arith.addf %43, %47 : vector<2x16x128xf32>
    %c0_27 = arith.constant 0 : index
    %c0_28 = arith.constant 0 : index
    %c0_29 = arith.constant 0 : index
    %49 = vector.load %arg6[%c0_27, %c0_28, %c0_29] : memref<1x16x1xf32, #tpu.memory_space<vmem>>, vector<1x16x1xf32>
    %50 = vector.shape_cast %49 : vector<1x16x1xf32> to vector<16x1xf32>
    %51 = vector.shape_cast %50 : vector<16x1xf32> to vector<1x16x1xf32>
    %52 = vector.broadcast %51 : vector<1x16x1xf32> to vector<2x16x128xf32>
    %53 = arith.mulf %48, %52 : vector<2x16x128xf32>
    %cst_30 = arith.constant dense<0.000000e+00> : vector<2x128xf32>
    %54 = vector.multi_reduction <add>, %53, %cst_30 [1] : vector<2x16x128xf32> to vector<2x128xf32>
    %55 = vector.broadcast %32 : vector<2x16x1xf32> to vector<2x16x128xf32>
    %56 = arith.mulf %48, %55 : vector<2x16x128xf32>
    %cst_31 = arith.constant dense<0.000000e+00> : vector<2x128xf32>
    %57 = vector.multi_reduction <add>, %56, %cst_31 [1] : vector<2x16x128xf32> to vector<2x128xf32>
    %58 = arith.divf %57, %54 : vector<2x128xf32>
    %c0_i32_32 = arith.constant 0 : i32
    %59 = arith.cmpi eq, %arg0, %c0_i32_32 : i32
    %60 = arith.extui %59 : i1 to i32
    %c0_i32_33 = arith.constant 0 : i32
    %61 = arith.cmpi ne, %60, %c0_i32_33 : i32
    scf.if %61 {
      %70 = vector.extract_strided_slice %58 {offsets = [0, 0], sizes = [2, 4], strides = [1, 1]} : vector<2x128xf32> to vector<2x4xf32>
      %c0_38 = arith.constant 0 : index
      %c0_39 = arith.constant 0 : index
      %71 = vector.load %arg11[%c0_38, %c0_39] : memref<2x4xf32, #tpu.memory_space<vmem>>, vector<2x4xf32>
      tpu.vector_store %arg11[%c0_38, %c0_39], %70 {strides = array<i32>} : memref<2x4xf32, #tpu.memory_space<vmem>>, vector<2x4xf32>,
    } else {
    }
    %c0_i32_34 = arith.constant 0 : i32
    %62 = arith.cmpi sgt, %arg0, %c0_i32_34 : i32
    %c2_i32 = arith.constant 2 : i32
    %63 = arith.cmpi slt, %arg0, %c2_i32 : i32
    %64 = arith.andi %62, %63 : i1
    %65 = arith.extui %64 : i1 to i32
    %c0_i32_35 = arith.constant 0 : i32
    %66 = arith.cmpi ne, %65, %c0_i32_35 : i32
    scf.if %66 {
      %c0_38 = arith.constant 0 : index
      %c0_39 = arith.constant 0 : index
      %70 = vector.load %arg11[%c0_38, %c0_39] : memref<2x4xf32, #tpu.memory_space<vmem>>, vector<2x4xf32>
      %71 = vector.extract_strided_slice %70 {offsets = [0, 0], sizes = [2, 1], strides = [1, 1]} : vector<2x4xf32> to vector<2x1xf32>
      %72 = vector.extract_strided_slice %58 {offsets = [0, 0], sizes = [2, 4], strides = [1, 1]} : vector<2x128xf32> to vector<2x4xf32>
      %73 = vector.broadcast %71 : vector<2x1xf32> to vector<2x4xf32>
      %74 = arith.mulf %73, %72 : vector<2x4xf32>
      %75 = vector.extract_strided_slice %70 {offsets = [0, 1], sizes = [2, 1], strides = [1, 1]} : vector<2x4xf32> to vector<2x1xf32>
      %76 = vector.extract_strided_slice %58 {offsets = [0, 4], sizes = [2, 4], strides = [1, 1]} : vector<2x128xf32> to vector<2x4xf32>
      %77 = vector.broadcast %75 : vector<2x1xf32> to vector<2x4xf32>
      %78 = arith.mulf %77, %76 : vector<2x4xf32>
      %79 = arith.addf %74, %78 : vector<2x4xf32>
      %80 = vector.extract_strided_slice %70 {offsets = [0, 2], sizes = [2, 1], strides = [1, 1]} : vector<2x4xf32> to vector<2x1xf32>
      %81 = vector.extract_strided_slice %58 {offsets = [0, 8], sizes = [2, 4], strides = [1, 1]} : vector<2x128xf32> to vector<2x4xf32>
      %82 = vector.broadcast %80 : vector<2x1xf32> to vector<2x4xf32>
      %83 = arith.mulf %82, %81 : vector<2x4xf32>
      %84 = arith.addf %79, %83 : vector<2x4xf32>
      %85 = vector.extract_strided_slice %70 {offsets = [0, 3], sizes = [2, 1], strides = [1, 1]} : vector<2x4xf32> to vector<2x1xf32>
      %86 = vector.extract_strided_slice %58 {offsets = [0, 12], sizes = [2, 4], strides = [1, 1]} : vector<2x128xf32> to vector<2x4xf32>
      %87 = vector.broadcast %85 : vector<2x1xf32> to vector<2x4xf32>
      %88 = arith.mulf %87, %86 : vector<2x4xf32>
      %89 = arith.addf %84, %88 : vector<2x4xf32>
      %c0_40 = arith.constant 0 : index
      %c0_41 = arith.constant 0 : index
      %90 = vector.load %arg11[%c0_40, %c0_41] : memref<2x4xf32, #tpu.memory_space<vmem>>, vector<2x4xf32>
      tpu.vector_store %arg11[%c0_40, %c0_41], %89 {strides = array<i32>} : memref<2x4xf32, #tpu.memory_space<vmem>>, vector<2x4xf32>,
    } else {
    }
    %c2_i32_36 = arith.constant 2 : i32
    %67 = arith.cmpi eq, %arg0, %c2_i32_36 : i32
    %68 = arith.extui %67 : i1 to i32
    %c0_i32_37 = arith.constant 0 : i32
    %69 = arith.cmpi ne, %68, %c0_i32_37 : i32
    scf.if %69 {
      %c0_38 = arith.constant 0 : index
      %c0_39 = arith.constant 0 : index
      %70 = vector.load %arg11[%c0_38, %c0_39] : memref<2x4xf32, #tpu.memory_space<vmem>>, vector<2x4xf32>
      %71 = vector.extract_strided_slice %58 {offsets = [0, 0], sizes = [2, 4], strides = [1, 1]} : vector<2x128xf32> to vector<2x4xf32>
      %72 = arith.mulf %70, %71 : vector<2x4xf32>
      %cst_40 = arith.constant dense<0.000000e+00> : vector<2xf32>
      %73 = vector.multi_reduction <add>, %72, %cst_40 [1] : vector<2x4xf32> to vector<2xf32>
      %74 = vector.shape_cast %73 : vector<2xf32> to vector<2x1xf32>
      %c0_41 = arith.constant 0 : index
      %c0_42 = arith.constant 0 : index
      %75 = vector.load %arg8[%c0_41, %c0_42] : memref<2x1xf32, #tpu.memory_space<vmem>>, vector<2x1xf32>
      tpu.vector_store %arg8[%c0_41, %c0_42], %74 {strides = array<i32>} : memref<2x1xf32, #tpu.memory_space<vmem>>, vector<2x1xf32>,
    } else {
    }
    return
  }
  func.func @transform_0(%arg0: i32, %arg1: memref<3xi32, #tpu.memory_space<smem>>) -> (i32, i32, i32) {
    %c0_i32 = arith.constant 0 : i32
    %c0_i32_0 = arith.constant 0 : i32
    %c0_i32_1 = arith.constant 0 : i32
    return %arg0, %c0_i32, %c0_i32_0 : i32, i32, i32
  }
  func.func @transform_1(%arg0: i32, %arg1: memref<3xi32, #tpu.memory_space<smem>>) -> (i32, i32) {
    %c0_i32 = arith.constant 0 : i32
    %c0_i32_0 = arith.constant 0 : i32
    %c0_i32_1 = arith.constant 0 : i32
    return %c0_i32, %c0_i32_0 : i32, i32
  }
  func.func @transform_2(%arg0: i32, %arg1: memref<3xi32, #tpu.memory_space<smem>>) -> (i32, i32, i32) {
    %0 = arith.index_cast %arg0 : i32 to index
    %1 = memref.load %arg1[%0] : memref<3xi32, #tpu.memory_space<smem>>
    %c0_i32 = arith.constant 0 : i32
    %c0_i32_0 = arith.constant 0 : i32
    %c0_i32_1 = arith.constant 0 : i32
    return %1, %c0_i32, %c0_i32_0 : i32, i32, i32
  }
  func.func @transform_3(%arg0: i32, %arg1: memref<3xi32, #tpu.memory_space<smem>>) -> (i32, i32, i32) {
    %0 = arith.index_cast %arg0 : i32 to index
    %1 = memref.load %arg1[%0] : memref<3xi32, #tpu.memory_space<smem>>
    %c0_i32 = arith.constant 0 : i32
    %c0_i32_0 = arith.constant 0 : i32
    %c0_i32_1 = arith.constant 0 : i32
    return %1, %c0_i32, %c0_i32_0 : i32, i32, i32
  }
  func.func @transform_4(%arg0: i32, %arg1: memref<3xi32, #tpu.memory_space<smem>>) -> (i32, i32, i32) {
    %c0_i32 = arith.constant 0 : i32
    %c0_i32_0 = arith.constant 0 : i32
    %c0_i32_1 = arith.constant 0 : i32
    return %arg0, %c0_i32, %c0_i32_0 : i32, i32, i32
  }
  func.func @transform_5(%arg0: i32, %arg1: memref<3xi32, #tpu.memory_space<smem>>) -> (i32, i32, i32, i32) {
    %c0_i32 = arith.constant 0 : i32
    %c0_i32_0 = arith.constant 0 : i32
    %c0_i32_1 = arith.constant 0 : i32
    %c0_i32_2 = arith.constant 0 : i32
    return %arg0, %c0_i32, %c0_i32_0, %c0_i32_1 : i32, i32, i32, i32
  }
  func.func @transform_6(%arg0: i32, %arg1: memref<3xi32, #tpu.memory_space<smem>>) -> (i32, i32) {
    %c0_i32 = arith.constant 0 : i32
    %c0_i32_0 = arith.constant 0 : i32
    %c0_i32_1 = arith.constant 0 : i32
    return %c0_i32, %c0_i32_0 : i32, i32
  }
}

</mosaic_0001>

<bundles_post_ra>
// kernel: _lambda_.1
= control target key start
LH: loop header
LB: loop body
LE: loop exit
PB: predicated region body
PF: predicated region fallthrough
CT: control target
= control target key end

     0   :  { %s1382_s0 = inlined_call_operand.vmem [shape: s32[3], index: 0, kind: input, shape index: {}]   ;;  %s1383_s1 = inlined_call_operand.vmem [shape: f32[3,16,128], index: 1, kind: input, shape index: {}]   ;;  %s1384_s2 = inlined_call_operand.vmem [shape: f32[32,128], index: 2, kind: input, shape index: {}]   ;;  %s1385_s3 = inlined_call_operand.vmem [shape: f32[3,32,128], index: 3, kind: input, shape index: {}]   ;;  %s1386_s4 = inlined_call_operand.vmem [shape: f32[3,1,128], index: 4, kind: input, shape index: {}]   ;;  %s1387_s5 = inlined_call_operand.vmem [shape: f32[3,16,1], index: 5, kind: input, shape index: {}]   ;;  %s1388_s6 = inlined_call_operand.vmem [shape: f32[3,2,16,1], index: 6, kind: input, shape index: {}]   ;;  %s1389_s7 = inlined_call_operand.vmem [shape: f32[2,1], index: 7, kind: output, shape index: {}]  }
   0x1   :  { %s12_s26 = sshll.u32 %s1382_s0, 4  ;;  %s13_s26 = int_to_ptr.vmem [resolvable:$true] %s12_s26 }
   0x2   :  { %s1141_s27 = scalar_lea.vmem %s13_s26, 16  ;;  %p1146_p1 = scmp.lt.s32.totalorder %s13_s26, %s13_s26 }
   0x3   :  { %p1142_p0 = scmp.ne.s32.totalorder %s13_s26, %s1141_s27  ;;  %p1147_p2 = scmp.lt.s32.totalorder %s1141_s27, %s1141_s27 }
   0x5   :  { %p1148_p3 = por %p1147_p2, %p1146_p1 }
   0x7   :  { %p1149_p4 = pnand %p1148_p3, %p1142_p0 }
   0x9   :  { %1152 = shalt.err (!%p1149_p4)  }
   0xa   :  { %s1163_s28 = smov [#allocation6]  }
   0xb   :  { %15 = dma.vmem_to_smem %s13_s26, 16, %s1163_s28, [#allocation5] }
   0xc   :  { %1157 = dma.done.wait [#allocation5], 16 }
   0xd   :  { %1158 = vsyncadd [#allocation5], 4294967280 }
   0xe   :  { %17 = sfence }
   0xf   :  { %s1223_s29 = smov 0  }
  0x10 LB: > { %s1229_s0 = sadd.s32 4294967295, %s1161_s29   ;;  %p992_p5 = scmp.ge.s32.totalorder %s1161_s29, 1  ;;  %s1161_s29 = sphi %s1223_s29, %s23_s29  }
  0x11   : > { %p260_p6 = scmp.lt.s32.totalorder %s1161_s29, 4 }
  0x13   : > { %p261_p7 = pnand %p992_p5, %p260_p6 }
  0x14   : > { %p305_p8 = scmp.lt.s32.totalorder (!%p261_p7), %s1229_s0, 2  ;;  %s310_s30 = sld [smem:[#allocation6 + %s1229_s0]] (!%p261_p7) }
  0x15   : > { %264 = sbr.rel (%p261_p7) target bundleno = 1320 (0x528), region = 44  ;;  %s317_s8 = sld [smem:[#allocation6 + %s1229_s0]] (!%p261_p7) }
  0x16   : > { %p1001_p11 = scmp.ne.s32.totalorder (!%p261_p7), %s1229_s0, 0 }
  0x1a   : > { %p311_p9 = scmp.lt.s32.totalorder (!%p261_p7), %s310_s30, 2 }
  0x1b   : > { %p318_p10 = scmp.lt.s32.totalorder (!%p261_p7), %s317_s8, 2 }
  0x1c   : > { %s306_s9 = scalar_select %p305_p8, %s1229_s0, 2 }
  0x1d   : > { %s1391_s30 = smov (!%p311_p9, %s310_s30), 2  ;;  %s1393_s8 = smov (!%p318_p10, %s317_s8), 2 }
  0x1e   : > { %s1017_s10 = sshll.u32 %s306_s9, 4  ;;  %s1020_s11 = sshll.u32 %s306_s9, 5  ;;  %vm336_vm0 = vcmask (!%p1001_p11), 254976   ;;  %v1164_v0 = vmov (!%p1001_p11), 0.0  }
  0x1f   : > { %s1242_s14 = scalar_lea.vmem %s1383_s1, %s1017_s10  ;;  %s1247_s17 = scalar_lea.vmem %s1387_s5, %s1017_s10  ;;  %337 = vst.msk [vmem:[#allocation2] sm:$0x3] (!%p1001_p11), %vm336_vm0, %v1164_v0  ;;  %338 = vst.msk [vmem:[#allocation3] sm:$0x3] (!%p1001_p11), %vm336_vm0, %v1164_v0 }
  0x20   : > { %s1252_s20 = scalar_lea.vmem %s1388_s6, %s1020_s11  ;;  %s1018_s21 = sshll.u32 %s1391_s30, 5 }
  0x21   : > { %s1259_s24 = scalar_lea.vmem %s1385_s3, %s1018_s21  ;;  %s320_s27 = scalar_lea.vmem %s1386_s4, %s1393_s8 }
  0x22   : > { %335 = sbr.rel (%p1001_p11) target bundleno = 41 (0x29), region = 48 }
  0x29 PF: > { %v342_v1 = vld [vmem:[%s1384_s2] sm:$0xff]  ;;  %v343_v2 = vld [vmem:[%s1384_s2 + $0x8] sm:$0xff]  ;;  %v344_v3 = vld [vmem:[%s1384_s2 + $0x10] sm:$0xff]  ;;  %v1165_v4 = vmov 0.0|0.0   ;;  %vm1166_vm1 = vmmov 0   ;;  %v1167_v7 = vmov 0.0   ;;  %v424_v12 = vlaneseq }
  0x2a   : > { %1059 = vmatprep.subr.bf16.mxu0 %v1165_v4  ;;  %v1060_v5 = vpack.c.bf16 %v343_v2, %v342_v1  ;;  %v345_v6 = vld [vmem:[%s1384_s2 + $0x18] sm:$0xff]  ;;  %1042 = vmatprep.mubr.msk.f32.mxu0 %vm1166_vm1, %v1167_v7  ;;  %v341_v9 = vld [vmem:[#allocation2] sm:$0x3]  ;;  %vm346_vm2 = vcmask 261120   ;;  %v1168_v10 = vmov 1966171168  }
  0x2b   : > { %v1063_v8 = vpack.c.bf16 %v345_v6, %v344_v3  ;;  %v422_v11 = vunpack.c.l.s4 %v1168_v10  ;;  %v425_v14 = vshrl.u32 %v424_v12, 7  ;;  %v339_v22 = vld [vmem:[%s1242_s14] sm:$0xff]  ;;  %v340_v26 = vld [vmem:[%s1242_s14 + $0x8] sm:$0xff]  ;;  %s1169_s16 = smov 64   ;;  %s1170_s14 = smov 32   ;;  %vm619_vm3 = vcmask 1048320  }
  0x2c   : > { %1061 = vmatpush3.bf16.msra.mxu0 %v1060_v5  ;;  %v1007_v31 = vld.sshfl [vmem:[#allocation3] sm:$0x11 pattern:$0x75316420]  ;;  %vm651_vm4 = vcmask 523520   ;;  %vm640_vm5 = vcmask 1041409  }
  0x2d   : > { %1062 = vmatprep.subr.bf16.mxu0 %v1165_v4  ;;  %v423_v13 = vunpack.c.0.s8 %v422_v11  ;;  %v445_v18 = vsub.s32 0, %v425_v14  ;;  %v494_v49 = vcombine.high %v1007_v31, %v1007_v31  ;;  %vm645_vm6 = vcmask 254976  }
  0x2e   : > { %vm852_vm7 = vcmask (!%p1001_p11), 25600  }
  0x2f   : > { %v426_v15 = vsub.s32 %v423_v13, %v425_v14 }
  0x30   : > { %1064 = vmatpush3.bf16.msra.mxu0 %v1063_v8 }
  0x31   : > { %v501_v33 = vrot.slane %v1007_v31, %v426_v15  ;;  %v508_v51 = vrot.slane %v494_v49, %v426_v15 }
  0x33   : > { %1043 = vmatmul.mubr.msk.f32.vlgmr.msra.gmra.mrb[0].mxu0 %vm346_vm2, %v341_v9  ;;  %v512_v35 = vrot.slane %v501_v33, %v445_v18  ;;  %v516_v55 = vrot.slane %v508_v51, %v445_v18 }
 0x106   : > { %v416_v16 = vpop.f32.mrb[0].mxu0 }
 0x107   : > { %v427_v17 = vrot.slane %v416_v16, %v426_v15  ;;  %v1044_v19 = vpop.f32.mrb[1].mxu0  ;;  %v1171_v16 = vmov 0  }
 0x108   : > { %1099 = vset.pattern.permute.xlu1 %v1171_v16  ;;  %1098 = vset.pattern.permute.xlu0 %v1171_v16 }
 0x109   : > { %v428_v20 = vcombine.high %v427_v17, %v427_v17  ;;  %v435_v21 = vrot.slane %v427_v17, %v426_v15 }
 0x10b   : > { %v442_v23 = vrot.slane %v428_v20, %v426_v15  ;;  %v446_v24 = vrot.slane %v435_v21, %v445_v18  ;;  %v677_v20 = vld [vmem:[%s1259_s24] sm:$0xff]  ;;  %v678_v21 = vld [vmem:[%s1259_s24 + $0x8] sm:$0xff] }
 0x10d   : > { %v453_v25 = vadd.f32 %v446_v24, %v339_v22  ;;  %v450_v27 = vrot.slane %v442_v23, %v445_v18  ;;  %v454_v28 = vadd.f32 %v446_v24, %v340_v26  ;;  %v679_v23 = vld [vmem:[%s1259_s24 + $0x10] sm:$0xff]  ;;  %v680_v24 = vld [vmem:[%s1259_s24 + $0x18] sm:$0xff] }
 0x10f   : > { %1100 = vtanh.f32 %v453_v25  ;;  %v455_v29 = vadd.f32 %v450_v27, %v339_v22  ;;  %v456_v30 = vadd.f32 %v450_v27, %v340_v26  ;;  %v1003_v38 = vmul.f32 -1.442695, %v453_v25 }
 0x110   : > { %1102 = vtanh.f32 %v454_v28  ;;  %v1004_v39 = vmul.f32 -1.442695, %v454_v28  ;;  %v1065_v22 = vpack.c.bf16 %v678_v21, %v677_v20  ;;  %v1069_v25 = vpack.c.bf16 %v680_v24, %v679_v23 }
 0x111   : > { %1104 = vtanh.f32 %v455_v29  ;;  %v1005_v40 = vmul.f32 -1.442695, %v455_v29  ;;  %v1006_v41 = vmul.f32 -1.442695, %v456_v30 }
 0x112   : > { %1106 = vtanh.f32 %v456_v30  ;;  %1066 = vmatprep.subr.bf16.mxu1 %v1065_v22 }
 0x113   : > { %1108 = vpow2.f32 %v1003_v38  ;;  %1068 = vmatpush3.bf16.msra.mxu1 %v1065_v22  ;;  %v794_v38 = vld [vmem:[%s1247_s17 + $0x8] sm:$0xff] }
 0x114   : > { %1110 = vpow2.f32 %v1004_v39  ;;  %1070 = vmatprep.subr.bf16.mxu1 %v1069_v25  ;;  %v793_v39 = vld [vmem:[%s1247_s17] sm:$0xff]  ;;  %s1172_s17 = smov 96  }
 0x115   : > { %1112 = vpow2.f32 %v1005_v40 }
 0x116   : > { %1114 = vpow2.f32 %v1006_v41 }
 0x117   : > { %1072 = vmatpush3.bf16.msra.mxu1 %v1069_v25 }
 0x119   : > { %v1101_v32 = vpop.eup %1100 }
 0x11a   : > { %531 = vrot.lane.b32.xlu0 %v1101_v32, %s1169_s16  ;;  %v1103_v34 = vpop.eup %1102 }
 0x11b   : > { %v1105_v36 = vpop.eup %1104 }
 0x11c   : > { %535 = vrot.lane.b32.xlu1 %v1105_v36, %s1169_s16  ;;  %v1107_v37 = vpop.eup %1106  ;;  %v594_v36 = vld [vmem:[%s1252_s20 + $0x18] sm:$0xff] }
 0x11d   : > { %v1109_v42 = vpop.eup %1108 }
 0x11e   : > { %533 = vrot.lane.b32.xlu0 %v1103_v34, %s1169_s16  ;;  %v469_v43 = vadd.f32 1.0, %v1109_v42  ;;  %v1111_v44 = vpop.eup %1110  ;;  %v591_v34 = vld [vmem:[%s1252_s20] sm:$0xff] }
 0x11f   : > { %v470_v45 = vadd.f32 1.0, %v1111_v44  ;;  %v1113_v46 = vpop.eup %1112 }
 0x120   : > { %537 = vrot.lane.b32.xlu1 %v1107_v37, %s1169_s16  ;;  %1116 = vrcp.f32 %v469_v43  ;;  %v1115_v47 = vpop.eup %1114  ;;  %v471_v48 = vadd.f32 1.0, %v1113_v46  ;;  %v593_v37 = vld [vmem:[%s1252_s20 + $0x10] sm:$0xff] }
 0x121   : > { %1118 = vrcp.f32 %v470_v45  ;;  %v472_v50 = vadd.f32 1.0, %v1115_v47 }
 0x122   : > { %517 = vrot.lane.b32.xlu0 %v512_v35, %s1170_s14  ;;  %1120 = vrcp.f32 %v471_v48  ;;  %v592_v35 = vld [vmem:[%s1252_s20 + $0x8] sm:$0xff] }
 0x123   : > { %1122 = vrcp.f32 %v472_v50 }
 0x12a   : > { %v1117_v52 = vpop.eup %1116 }
 0x12b   : > { %v1119_v56 = vpop.eup %1118 }
 0x12c   : > { %v1121_v60 = vpop.eup %1120 }
 0x12d   : > { %v1123_v62 = vpop.eup %1122 }
 0x18c   : > { %v532_v53 = vpop.permute.xlu0 %531 }
 0x18d   : > { %v543_v54 = vmul.f32 %v1117_v52, %v532_v53 }
 0x18e   : > { %v536_v59 = vpop.permute.xlu1 %535 }
 0x18f   : > { %551 = vrot.lane.b32.xlu1 %v543_v54, %s1170_s14  ;;  %v545_v61 = vmul.f32 %v1121_v60, %v536_v59 }
 0x190   : > { %v534_v57 = vpop.permute.xlu0 %533 }
 0x191   : > { %v544_v58 = vmul.f32 %v1119_v56, %v534_v57 }
 0x192   : > { %v538_v63 = vpop.permute.xlu1 %537 }
 0x193   : > { %519 = vrot.lane.b32.xlu1 %v516_v55, %s1170_s14  ;;  %553 = vrot.lane.b32.xlu0 %v544_v58, %s1170_s14  ;;  %v546_v0 = vmul.f32 %v1123_v62, %v538_v63 }
 0x194   : > { %v518_v1 = vpop.permute.xlu0 %517 }
 0x195   : > { %v523_v2 = vmul.f32 %v1117_v52, %v518_v1  ;;  %v524_v5 = vmul.f32 %v1119_v56, %v518_v1 }
 0x197   : > { %555 = vrot.lane.b32.xlu0 %v545_v61, %s1170_s14  ;;  %557 = vrot.lane.b32.xlu1 %v546_v0, %s1170_s14 }
 0x201   : > { %v552_v3 = vpop.permute.xlu1 %551 }
 0x202   : > { %v1293_v4 = vadd.f32 %v552_v3, %v523_v2 }
 0x204   : > { %1124 = vtanh.f32 %v1293_v4 }
 0x205   : > { %v554_v6 = vpop.permute.xlu0 %553  ;;  %v520_v7 = vpop.permute.xlu1 %519 }
 0x206   : > { %v1296_v8 = vadd.f32 %v554_v6, %v524_v5  ;;  %v525_v9 = vmul.f32 %v1121_v60, %v520_v7  ;;  %v526_v11 = vmul.f32 %v1123_v62, %v520_v7 }
 0x208   : > { %1126 = vtanh.f32 %v1296_v8 }
 0x209   : > { %v556_v10 = vpop.permute.xlu0 %555  ;;  %v558_v13 = vpop.permute.xlu1 %557 }
 0x20a   : > { %v1299_v12 = vadd.f32 %v556_v10, %v525_v9  ;;  %v1302_v14 = vadd.f32 %v558_v13, %v526_v11 }
 0x20c   : > { %1128 = vtanh.f32 %v1299_v12 }
 0x20d   : > { %1130 = vtanh.f32 %v1302_v14 }
 0x20e   : > { %v1125_v15 = vpop.eup %1124 }
 0x20f   : > { %575 = vrot.lane.b32.xlu0 %v1125_v15, %s1169_s16 }
 0x212   : > { %v1127_v17 = vpop.eup %1126 }
 0x213   : > { %577 = vrot.lane.b32.xlu1 %v1127_v17, %s1169_s16 }
 0x216   : > { %v1129_v18 = vpop.eup %1128 }
 0x217   : > { %579 = vrot.lane.b32.xlu0 %v1129_v18, %s1169_s16  ;;  %v1131_v19 = vpop.eup %1130 }
 0x218   : > { %581 = vrot.lane.b32.xlu1 %v1131_v19, %s1169_s16 }
 0x281   : > { %v576_v26 = vpop.permute.xlu0 %575 }
 0x282   : > { %v587_v27 = vmul.f32 %v1117_v52, %v576_v26 }
 0x284   : > { %692 = vrot.lane.b32.xlu0 %v587_v27, %s1170_s14 }
 0x285   : > { %v578_v28 = vpop.permute.xlu1 %577 }
 0x286   : > { %v588_v29 = vmul.f32 %v1119_v56, %v578_v28 }
 0x288   : > { %694 = vrot.lane.b32.xlu1 %v588_v29, %s1170_s14 }
 0x289   : > { %v580_v30 = vpop.permute.xlu0 %579 }
 0x28a   : > { %v589_v31 = vmul.f32 %v1121_v60, %v580_v30  ;;  %v582_v32 = vpop.permute.xlu1 %581 }
 0x28b   : > { %v590_v33 = vmul.f32 %v1123_v62, %v582_v32 }
 0x28c   : > { %696 = vrot.lane.b32.xlu0 %v589_v31, %s1170_s14 }
 0x28d   : > { %698 = vrot.lane.b32.xlu1 %v590_v33, %s1170_s14 }
 0x290   : > { %597 = vperm.xlu0 %1098, %v591_v34   ;;  %v1008_v34 = vld [vmem:[%s320_s27] ss:$0 sm:$0xff] }
 0x291   : > { %602 = vperm.xlu1 %1099, %v592_v35  }
 0x294   : > { %612 = vperm.xlu0 %1098, %v594_v36  }
 0x295   : > { %607 = vperm.xlu1 %1099, %v593_v37  }
 0x298   : > { %802 = vperm.xlu0 %1098, %v794_v38  }
 0x299   : > { %797 = vperm.xlu1 %1099, %v793_v39  }
 0x2f6   : > { %v693_v40 = vpop.permute.xlu0 %692 }
 0x2f7   : > { %1053 = vmatprep.mubr.msk.f32.mxu1 %vm346_vm2, %v693_v40 }
 0x2fa   : > { %v695_v41 = vpop.permute.xlu1 %694 }
 0x2fb   : > { %1054 = vmatmul.mubr.msk.f32.vlgmr.msra.gmra.mrb[0].mxu1 %vm346_vm2, %v695_v41 }
 0x2fe   : > { %v697_v42 = vpop.permute.xlu0 %696 }
 0x2ff   : > { %1056 = vmatprep.mubr.msk.f32.mxu1 %vm346_vm2, %v697_v42  ;;  %v699_v43 = vpop.permute.xlu1 %698 }
 0x300   : > { %1057 = vmatmul.mubr.msk.f32.gmra.mrb[2].mxu1 %vm346_vm2, %v699_v43 }
 0x30f   : > { %v1327_v44 = vpop.permute.xlu0 %597 }
 0x310   : > { %v615_v45 = vmul.f32 %v1327_v44, %v587_v27  ;;  %v647_v46 = vmul.f32 %v1327_v44, %v1293_v4  ;;  %v1332_v47 = vpop.permute.xlu1 %602 }
 0x311   : > { %v616_v48 = vmul.f32 %v1332_v47, %v588_v29  ;;  %v648_v49 = vmul.f32 %v1332_v47, %v1296_v8 }
 0x312   : > { %v620_v50 = vsel %vm619_vm3, %v615_v45, 0.0  ;;  %v652_v51 = vsel %vm651_vm4, %v647_v46, 0.0 }
 0x313   : > { %v1339_v52 = vpop.permute.xlu0 %612  ;;  %v621_v53 = vsel %vm619_vm3, %v616_v48, 0.0  ;;  %v653_v54 = vsel %vm651_vm4, %v648_v49, 0.0 }
 0x314   : > { %v618_v55 = vmul.f32 %v1339_v52, %v590_v33  ;;  %v650_v56 = vmul.f32 %v1339_v52, %v1302_v14  ;;  %v622_v57 = vadd.f32 %v621_v53, %v620_v50  ;;  %v654_v58 = vadd.f32 %v653_v54, %v652_v51  ;;  %v1346_v59 = vpop.permute.xlu1 %607 }
 0x315   : > { %v617_v60 = vmul.f32 %v1346_v59, %v589_v31  ;;  %v649_v61 = vmul.f32 %v1346_v59, %v1299_v12 }
 0x316   : > { %v630_v62 = vsel %vm619_vm3, %v618_v55, 0.0  ;;  %v662_v63 = vsel %vm651_vm4, %v650_v56, 0.0  ;;  %v623_v0 = vrot.slane %v622_v57, 4  ;;  %v655_v1 = vrot.slane %v654_v58, 4 }
 0x317   : > { %v629_v2 = vsel %vm619_vm3, %v617_v60, 0.0  ;;  %v661_v3 = vsel %vm651_vm4, %v649_v61, 0.0  ;;  %v803_v31 = vpop.permute.xlu0 %802 }
 0x318   : > { %v624_v4 = vadd.f32 %v623_v0, %v622_v57  ;;  %v656_v5 = vadd.f32 %v655_v1, %v654_v58  ;;  %v631_v6 = vadd.f32 %v630_v62, %v629_v2  ;;  %v663_v7 = vadd.f32 %v662_v63, %v661_v3  ;;  %v798_v30 = vpop.permute.xlu1 %797 }
 0x31a   : > { %v632_v8 = vrot.slane %v631_v6, 4  ;;  %v664_v9 = vrot.slane %v663_v7, 4  ;;  %v657_v10 = vrot.slane %v656_v5, 2  ;;  %v625_v11 = vrot.slane %v624_v4, 2 }
 0x31c   : > { %v633_v13 = vadd.f32 %v632_v8, %v631_v6  ;;  %v665_v12 = vadd.f32 %v664_v9, %v663_v7  ;;  %v658_v14 = vadd.f32 %v657_v10, %v656_v5  ;;  %v626_v15 = vadd.f32 %v625_v11, %v624_v4 }
 0x31e   : > { %v666_v16 = vrot.slane %v665_v12, 2  ;;  %v634_v17 = vrot.slane %v633_v13, 2  ;;  %v659_v18 = vrot.slane %v658_v14, 1  ;;  %v627_v20 = vrot.slane %v626_v15, 1 }
 0x320   : > { %v667_v19 = vadd.f32 %v666_v16, %v665_v12  ;;  %v635_v21 = vadd.f32 %v634_v17, %v633_v13  ;;  %v660_v24 = vadd.f32 %v659_v18, %v658_v14  ;;  %v628_v26 = vadd.f32 %v627_v20, %v626_v15 }
 0x322   : > { %v668_v22 = vrot.slane %v667_v19, 1  ;;  %v636_v23 = vrot.slane %v635_v21, 1 }
 0x324   : > { %v669_v25 = vadd.f32 %v668_v22, %v667_v19  ;;  %v637_v27 = vadd.f32 %v636_v23, %v635_v21 }
 0x326   : > { %v672_v28 = vsel %vm640_vm5, %v669_v25, %v660_v24  ;;  %v641_v29 = vsel %vm640_vm5, %v637_v27, %v628_v26 }
 0x327   : > { %673 = vrot.lane.b32.xlu0 %v672_v28, %s1172_s17  ;;  %642 = vrot.lane.b32.xlu1 %v641_v29, %s1170_s14 }
 0x399   : > { %v643_v32 = vpop.permute.xlu1 %642  ;;  %v674_v33 = vpop.permute.xlu0 %673 }
 0x39a   : > { %646 = vst.msk [vmem:[#allocation2] sm:$0x3] %vm645_vm6, %v643_v32  ;;  %676 = vst.msk [vmem:[#allocation3] sm:$0x3] %vm645_vm6, %v674_v33 }
 0x3ce   : > { %v1055_v35 = vpop.f32.mrb[0].mxu1 }
 0x3cf   : > { %v780_v36 = vadd.f32 %v1055_v35, %v1008_v34  ;;  %v774_v37 = vpop.f32.mrb[1].mxu1 }
 0x3d0   : > { %v775_v38 = vadd.f32 %v1008_v34, %v774_v37 }
 0x3d1   : > { %v806_v39 = vmul.f32 %v803_v31, %v780_v36  ;;  %v824_v40 = vmul.f32 %v780_v36, %v1332_v47 }
 0x3d2   : > { %v805_v41 = vmul.f32 %v798_v30, %v775_v38  ;;  %v823_v42 = vmul.f32 %v775_v38, %v1327_v44 }
 0x3d3   : > { %v1058_v46 = vpop.f32.mrb[2].mxu1 }
 0x3d4   : > { %v809_v43 = vadd.f32 %v806_v39, %v805_v41  ;;  %v827_v45 = vadd.f32 %v824_v40, %v823_v42  ;;  %v790_v48 = vadd.f32 %v1058_v46, %v1008_v34  ;;  %v784_v49 = vpop.f32.mrb[3].mxu1 }
 0x3d5   : > { %v785_v51 = vadd.f32 %v1008_v34, %v784_v49 }
 0x3d6   : > { %v810_v50 = vrot.slane %v809_v43, 4  ;;  %v828_v53 = vrot.slane %v827_v45, 4  ;;  %v808_v54 = vmul.f32 %v803_v31, %v790_v48  ;;  %v826_v55 = vmul.f32 %v790_v48, %v1339_v52 }
 0x3d7   : > { %v807_v57 = vmul.f32 %v798_v30, %v785_v51  ;;  %v825_v58 = vmul.f32 %v785_v51, %v1346_v59 }
 0x3d8   : > { %v811_v56 = vadd.f32 %v810_v50, %v809_v43  ;;  %v829_v62 = vadd.f32 %v828_v53, %v827_v45 }
 0x3d9   : > { %v816_v47 = vadd.f32 %v808_v54, %v807_v57  ;;  %v834_v61 = vadd.f32 %v826_v55, %v825_v58 }
 0x3da   : > { %v812_v60 = vrot.slane %v811_v56, 2  ;;  %v830_v3 = vrot.slane %v829_v62, 2 }
 0x3db   : > { %v817_v63 = vrot.slane %v816_v47, 4  ;;  %v835_v0 = vrot.slane %v834_v61, 4 }
 0x3dc   : > { %v813_v44 = vadd.f32 %v812_v60, %v811_v56  ;;  %v831_v52 = vadd.f32 %v830_v3, %v829_v62 }
 0x3dd   : > { %v818_v2 = vadd.f32 %v817_v63, %v816_v47  ;;  %v836_v6 = vadd.f32 %v835_v0, %v834_v61 }
 0x3de   : > { %v814_v1 = vrot.slane %v813_v44, 1  ;;  %v832_v59 = vrot.slane %v831_v52, 1 }
 0x3df   : > { %v819_v5 = vrot.slane %v818_v2, 2  ;;  %v837_v9 = vrot.slane %v836_v6, 2 }
 0x3e0   : > { %v815_v4 = vadd.f32 %v814_v1, %v813_v44  ;;  %v833_v13 = vadd.f32 %v832_v59, %v831_v52 }
 0x3e1   : > { %v820_v7 = vadd.f32 %v819_v5, %v818_v2  ;;  %v838_v11 = vadd.f32 %v837_v9, %v836_v6 }
 0x3e2   : > { %1132 = vrcp.f32 %v815_v4 }
 0x3e3   : > { %v821_v8 = vrot.slane %v820_v7, 1  ;;  %v839_v15 = vrot.slane %v838_v11, 1 }
 0x3e5   : > { %v822_v10 = vadd.f32 %v821_v8, %v820_v7  ;;  %v840_v16 = vadd.f32 %v839_v15, %v838_v11 }
 0x3e7   : > { %1134 = vrcp.f32 %v822_v10 }
 0x3ec   : > { %v1133_v12 = vpop.eup %1132  ;;  %847 = sbr.rel (%p1001_p11) target bundleno = 1014 (0x3f6), region = 52 }
 0x3ed   : > { %v842_v14 = vmul.f32 %v1133_v12, %v833_v13 }
 0x3f1   : > { %v1135_v17 = vpop.eup %1134 }
 0x3f2   : > { %v844_v18 = vmul.f32 %v1135_v17, %v840_v16 }
 0x3f4   : > { %v850_v19 = vsel %vm640_vm5, %v844_v18, %v842_v14 }
 0x3f5   : > { %853 = vst.msk [vmem:[#allocation4] sm:$0x3] %vm852_vm7, %v850_v19 }
 0x3f6 PF: > { %p854_p12 = scmp.gt.s32.totalorder %s1229_s0, 0 }
 0x3f8   : > { %p856_p13 = pnand %p854_p12, %p305_p8 }
 0x3f9   : > { %v1173_v21 = vmov (!%p856_p13), 2   ;;  %v1174_v22 = vmov (!%p856_p13), 0   ;;  %v1175_v23 = vmov (!%p856_p13), 3   ;;  %v1176_v24 = vmov (!%p856_p13), 1   ;;  %s1177_s8 = smov (!%p856_p13), 124   ;;  %s1178_s20 = smov (!%p856_p13), 120  }
 0x3fa   : > { %859 = sbr.rel (%p856_p13) target bundleno = 1167 (0x48f), region = 56  ;;  %1138 = vset.pattern.permute.xlu1 (!%p856_p13), %v1173_v21  ;;  %1136 = vset.pattern.permute.xlu0 (!%p856_p13), %v1174_v22  ;;  %v868_v25 = vsel (!%p856_p13), %vm640_vm5, %v844_v18, %v842_v14  ;;  %s1179_s21 = smov (!%p856_p13), 116   ;;  %vm898_vm8 = vcmask (!%p856_p13), 25600  }
 0x3fc   : > { %v860_v20 = vld [vmem:[#allocation4] sm:$0x3] (!%p856_p13) }
 0x3fd   : > { %881 = vperm.xlu1 (!%p856_p13), %1138, %v860_v20   ;;  %863 = vperm.xlu0 (!%p856_p13), %1136, %v860_v20  }
 0x401   : > { %1139 = vset.pattern.permute.xlu1 %v1175_v23  ;;  %1137 = vset.pattern.permute.xlu0 %v1176_v24 }
 0x402   : > { %890 = vperm.xlu1 %1139, %v860_v20   ;;  %872 = vperm.xlu0 %1137, %v860_v20  }
 0x406   : > { %875 = vrot.lane.b32.xlu1 %v868_v25, %s1177_s8  ;;  %884 = vrot.lane.b32.xlu0 %v868_v25, %s1178_s20 }
 0x407   : > { %1140 = vset.pattern.permute.xlu0 %v1175_v23 }
 0x40a   : > { %893 = vrot.lane.b32.xlu1 %v868_v25, %s1179_s21 }
 0x47c   : > { %v882_v26 = vpop.permute.xlu1 %881  ;;  %v864_v27 = vpop.permute.xlu0 %863 }
 0x47d   : > { %v870_v32 = vmul.f32 %v868_v25, %v864_v27 }
 0x481   : > { %v891_v28 = vpop.permute.xlu1 %890  ;;  %v873_v29 = vpop.permute.xlu0 %872 }
 0x485   : > { %v876_v30 = vpop.permute.xlu1 %875  ;;  %v885_v31 = vpop.permute.xlu0 %884 }
 0x486   : > { %v878_v33 = vmul.f32 %v876_v30, %v873_v29  ;;  %v887_v35 = vmul.f32 %v885_v31, %v882_v26 }
 0x488   : > { %v879_v34 = vadd.f32 %v878_v33, %v870_v32 }
 0x489   : > { %v894_v36 = vpop.permute.xlu1 %893 }
 0x48a   : > { %v888_v37 = vadd.f32 %v887_v35, %v879_v34  ;;  %v896_v38 = vmul.f32 %v894_v36, %v891_v28 }
 0x48c   : > { %v897_v39 = vadd.f32 %v896_v38, %v888_v37 }
 0x48e   : > { %899 = vst.msk [vmem:[#allocation4] sm:$0x3] %vm898_vm8, %v897_v39 }
 0x48f PF: > { %p1014_p0 = scmp.ne.s32.totalorder %s1229_s0, 2 }
 0x490   : > { %v907_v41 = vsel (!%p1014_p0), %vm640_vm5, %v844_v18, %v842_v14  ;;  %vm910_vm9 = vcmask (!%p1014_p0), 25600   ;;  %vm914_vm10 = vcmask (!%p1014_p0), 1024  }
 0x491   : > { %903 = sbr.rel (%p1014_p0) target bundleno = 1320 (0x528), region = 60 }
 0x495   : > { %v904_v40 = vld [vmem:[#allocation4] sm:$0x3] (!%p1014_p0) }
 0x496   : > { %v909_v42 = vmul.f32 (!%p1014_p0), %v907_v41, %v904_v40 }
 0x498   : > { %v911_v43 = vsel %vm910_vm9, %v909_v42, 0.0 }
 0x499   : > { %912 = vadd.xlane.f32.xlu0 %v911_v43 }
 0x526   : > { %v913_v45 = vpop.xlane.xlu0 %912 }
 0x527   : > { %915 = vst.msk [vmem:[%s1389_s7] sm:$0x3] %vm914_vm10, %v913_v45 }
 0x528 PF: > { %s23_s29 = sadd.s32 1, %s1161_s29  }
 0x529   : > { %p20_p1 = scmp.ge.s32.totalorder %s23_s29, 5  }
 0x52b   :  { %22 = sbr.rel (!%p20_p1) target bundleno = 16 (0x10), region = 98 }

</bundles_post_ra>
